<compile_context>
chip_gen: v6e
topology: v6e:2x2x1
jax: 0.10.0
libtpu: 0.0.40
codegen_flags: <defaults>
</compile_context>

<pallas_src>
import functools

import jax
import jax.numpy as jnp
from jax.experimental import pallas as pl
from jax.experimental.pallas import tpu as pltpu


def _kl_loss_kernel(im_ref, s_ref, out_ref, *, n_rows: int):
    """One grid step: partial KL sum of a (TILE_N, C) tile into an (8, C) slab."""
    i = pl.program_id(0)

    im = im_ref[...].astype(jnp.float32)
    s = s_ref[...].astype(jnp.float32)
    tile_n, c = im.shape

    # Mask rows past the true end of the array (last tile may be padded) and
    # zero-target entries (xlogy convention of nn.KLDivLoss).
    row = jax.lax.broadcasted_iota(jnp.int32, (tile_n, c), 0) + i * tile_n
    valid = (row < n_rows) & (s > 0.0)

    # One log per element (EUP) instead of log(s) - log(im).
    term = jnp.where(valid, s * jnp.log(s / im), jnp.float32(0.0))

    # Pure-VPU partial reduction: fold sublane groups of 8 into an (8, C) slab.
    out_ref[0] = term.reshape(tile_n // 8, 8, c).sum(axis=0)


def _choose_tile_n(n: int, c: int) -> int:
    # Aim for ~2 MiB (f32-equivalent) per input tile; rows multiple of 8 and no
    # larger than the sublane-rounded row count.  2 inputs x 2 pipeline buffers
    # stays well under the scoped VMEM limit on v5e/v6e/v7x.
    target_f32_bytes = 2 * 1024 * 1024
    rows = max(8, ((target_f32_bytes // (4 * c)) // 8) * 8)
    n_rounded = pl.cdiv(n, 8) * 8
    return int(min(rows, n_rounded))


def kl_loss_softmax(im: jax.Array, s: jax.Array, *, tile_n: int | None = None) -> jax.Array:
    """Pallas equivalent of KL_loss_softmax.forward(im, s). Returns a scalar f32."""
    assert im.shape == s.shape and im.ndim == 2
    n, c = im.shape
    if tile_n is None:
        tile_n = _choose_tile_n(n, c)
    assert tile_n % 8 == 0
    steps = pl.cdiv(n, tile_n)

    kernel = functools.partial(_kl_loss_kernel, n_rows=n)
    itemsize = jnp.dtype(im.dtype).itemsize

    partials = pl.pallas_call(
        kernel,
        out_shape=jax.ShapeDtypeStruct((steps, 8, c), jnp.float32),
        grid_spec=pl.GridSpec(
            grid=(steps,),
            in_specs=[
                pl.BlockSpec((tile_n, c), lambda i: (i, 0)),
                pl.BlockSpec((tile_n, c), lambda i: (i, 0)),
            ],
            out_specs=pl.BlockSpec((1, 8, c), lambda i: (i, 0, 0)),
        ),
        compiler_params=pltpu.CompilerParams(
            dimension_semantics=("parallel",),
            vmem_limit_bytes=32 * 1024 * 1024,
        ),
        cost_estimate=pl.CostEstimate(
            flops=5 * n * c,
            transcendentals=n * c,
            bytes_accessed=2 * n * c * itemsize + steps * 8 * c * 4,
        ),
    )(im, s)

    # Tiny final reduction (steps x 8 x C elements) done by XLA in the wrapper.
    return jnp.sum(partials)


def _reference(im, s):
    # Same formula as torch.nn.KLDivLoss(reduce=False)(log(im), s).sum()
    return jnp.sum(jnp.where(s > 0.0, s * (jnp.log(s) - jnp.log(im)), 0.0))


if __name__ == "__main__":
    key = jax.random.PRNGKey(0)
    k1, k2, k3, k4 = jax.random.split(key, 4)

    # Test 1: regular shape, single big tile.
    N, C = 32, 128
    im = jax.nn.softmax(jax.random.normal(k1, (N, C), dtype=jnp.float32), axis=-1)
    s = jax.nn.softmax(jax.random.normal(k2, (N, C), dtype=jnp.float32), axis=-1)
    loss = kl_loss_softmax(im, s)
    jax.block_until_ready(loss)
    ref = _reference(im, s)
    assert jnp.allclose(loss, ref, rtol=1e-4, atol=1e-4), (loss, ref)

    # Test 2: N not a multiple of the tile -> exercises the ragged-row mask.
    N2, C2 = 40, 128
    im2 = jax.nn.softmax(jax.random.normal(k3, (N2, C2), dtype=jnp.float32), axis=-1)
    s2 = jax.nn.softmax(jax.random.normal(k4, (N2, C2), dtype=jnp.float32), axis=-1)
    loss2 = kl_loss_softmax(im2, s2, tile_n=16)  # forces a partial last block
    jax.block_until_ready(loss2)
    ref2 = _reference(im2, s2)
    assert jnp.allclose(loss2, ref2, rtol=1e-4, atol=1e-4), (loss2, ref2)

    print("KERNEL_OK")
</pallas_src>

<mosaic_0001>
module attributes {stable_mosaic.version = 11 : i64} {
  func.func @_kl_loss_kernel(%arg0: i32, %arg1: memref<32x128xf32, #tpu.memory_space<vmem>>, %arg2: memref<32x128xf32, #tpu.memory_space<vmem>>, %arg3: memref<1x8x128xf32, #tpu.memory_space<vmem>>) attributes {dimension_semantics = [#tpu.dimension_semantics<parallel>], iteration_bounds = array<i64: 1>, scalar_prefetch = 0 : i64, scratch_operands = 0 : i64, tpu.core_type = #tpu.core_type<tc>, window_params = [{transform_indices = @transform_0, window_bounds = array<i64: 32, 128>}, {transform_indices = @transform_1, window_bounds = array<i64: 32, 128>}, {transform_indices = @transform_2, window_bounds = array<i64: 1, 8, 128>}]} {
    %c0 = arith.constant 0 : index
    %c0_0 = arith.constant 0 : index
    %0 = vector.load %arg1[%c0, %c0_0] : memref<32x128xf32, #tpu.memory_space<vmem>>, vector<32x128xf32>
    %c0_1 = arith.constant 0 : index
    %c0_2 = arith.constant 0 : index
    %1 = vector.load %arg2[%c0_1, %c0_2] : memref<32x128xf32, #tpu.memory_space<vmem>>, vector<32x128xf32>
    %2 = tpu.iota {dimensions = array<i32: 0>} : vector<32x128xi32>
    %c32_i32 = arith.constant 32 : i32
    %3 = arith.muli %arg0, %c32_i32 : i32
    %4 = vector.broadcast %3 : i32 to vector<32x128xi32>
    %5 = arith.addi %2, %4 : vector<32x128xi32>
    %c32_i32_3 = arith.constant 32 : i32
    %6 = vector.broadcast %c32_i32_3 : i32 to vector<32x128xi32>
    %7 = arith.cmpi slt, %5, %6 : vector<32x128xi32>
    %cst = arith.constant 0.000000e+00 : f32
    %8 = vector.broadcast %cst : f32 to vector<32x128xf32>
    %9 = arith.cmpf ogt, %1, %8 : vector<32x128xf32>
    %10 = arith.andi %7, %9 : vector<32x128xi1>
    %11 = arith.divf %1, %0 : vector<32x128xf32>
    %12 = math.log %11 : vector<32x128xf32>
    %13 = arith.mulf %1, %12 : vector<32x128xf32>
    %cst_4 = arith.constant 0.000000e+00 : f32
    %14 = vector.broadcast %cst_4 : f32 to vector<32x128xf32>
    %15 = arith.select %10, %13, %14 : vector<32x128xi1>, vector<32x128xf32>
    %16 = vector.shape_cast %15 : vector<32x128xf32> to vector<4x8x128xf32>
    %cst_5 = arith.constant dense<0.000000e+00> : vector<8x128xf32>
    %17 = vector.multi_reduction <add>, %16, %cst_5 [0] : vector<4x8x128xf32> to vector<8x128xf32>
    %c0_6 = arith.constant 0 : index
    %c0_7 = arith.constant 0 : index
    %c0_8 = arith.constant 0 : index
    %18 = vector.load %arg3[%c0_6, %c0_7, %c0_8] : memref<1x8x128xf32, #tpu.memory_space<vmem>>, vector<1x8x128xf32>
    %19 = vector.shape_cast %18 : vector<1x8x128xf32> to vector<8x128xf32>
    %20 = vector.shape_cast %17 : vector<8x128xf32> to vector<1x8x128xf32>
    tpu.vector_store %arg3[%c0_6, %c0_7, %c0_8], %20 {strides = array<i32>} : memref<1x8x128xf32, #tpu.memory_space<vmem>>, vector<1x8x128xf32>,
    return
  }
  func.func @transform_0(%arg0: i32) -> (i32, i32) {
    %c0_i32 = arith.constant 0 : i32
    %c0_i32_0 = arith.constant 0 : i32
    return %arg0, %c0_i32 : i32, i32
  }
  func.func @transform_1(%arg0: i32) -> (i32, i32) {
    %c0_i32 = arith.constant 0 : i32
    %c0_i32_0 = arith.constant 0 : i32
    return %arg0, %c0_i32 : i32, i32
  }
  func.func @transform_2(%arg0: i32) -> (i32, i32, i32) {
    %c0_i32 = arith.constant 0 : i32
    %c0_i32_0 = arith.constant 0 : i32
    %c0_i32_1 = arith.constant 0 : i32
    return %arg0, %c0_i32, %c0_i32_0 : i32, i32, i32
  }
}

</mosaic_0001>

<bundles_post_ra>
// kernel: tpu_custom_call.1
= control target key start
LH: loop header
LB: loop body
LE: loop exit
PB: predicated region body
PF: predicated region fallthrough
CT: control target
= control target key end

     0   :  { %7 = vsyncpa [#allocation3], 0  ;;  %s231_s0 = inlined_call_operand.hbm [shape: f32[32,128], index: 0, kind: input, shape index: {}]   ;;  %s232_s1 = inlined_call_operand.hbm [shape: f32[32,128], index: 1, kind: input, shape index: {}]   ;;  %s233_s2 = inlined_call_operand.hbm [shape: f32[1,8,128], index: 2, kind: output, shape index: {}]  }
   0x1   :  { %8 = vsyncpa [#allocation6], 0 }
   0x2   :  { %9 = vsyncpa [#allocation4], 0  ;;  %s202_s9 = smov [#allocation2]  }
   0x3   :  { %s15_s10 = sshll.u32 %s202_s9, 4  ;;  %s16_s10 = int_to_ptr.vmem [resolvable:$true] %s15_s10 }
   0x4   :  { %s144_s11 = scalar_lea.vmem %s16_s10, 512  ;;  %p149_p1 = scmp.lt.s32.totalorder %s16_s10, %s16_s10 }
   0x5   :  { %p145_p0 = scmp.ne.s32.totalorder %s16_s10, %s144_s11  ;;  %p150_p2 = scmp.lt.s32.totalorder %s144_s11, %s144_s11 }
   0x7   :  { %p151_p3 = por %p150_p2, %p149_p1 }
   0x9   :  { %p152_p4 = pnand %p151_p3, %p145_p0 }
   0xb   :  { %155 = shalt.err (!%p152_p4)
}
   0xc   :  { %s203_s12 = smov 128   ;;  %s204_s13 = smov 8  }
   0xd   :  { %21 = dma.hbm_to_vmem [thread:$0]  %s231_s0, 512, %s16_s10, [#allocation3], %s203_s12, %s203_s12, %s204_s13  }
   0xe   :  { %s205_s16 = smov [#allocation5]  }
   0xf   :  { %s27_s17 = sshll.u32 %s205_s16, 4  ;;  %s28_s17 = int_to_ptr.vmem [resolvable:$true] %s27_s17 }
  0x10   :  { %s164_s18 = scalar_lea.vmem %s28_s17, 512  ;;  %p169_p6 = scmp.lt.s32.totalorder %s28_s17, %s28_s17 }
  0x11   :  { %p165_p5 = scmp.ne.s32.totalorder %s28_s17, %s164_s18  ;;  %p170_p7 = scmp.lt.s32.totalorder %s164_s18, %s164_s18 }
  0x13   :  { %p171_p8 = por %p170_p7, %p169_p6 }
  0x15   :  { %p172_p9 = pnand %p171_p8, %p165_p5 }
  0x17   :  { %175 = shalt.err (!%p172_p9)
}
  0x18   :  { %33 = dma.hbm_to_vmem [thread:$0]  %s232_s1, 512, %s28_s17, [#allocation6], %s203_s12, %s203_s12, %s204_s13  }
  0x19   :  { %196 = dma.done.wait [#allocation3], 512  }
  0x1a   :  { %197 = vsyncadd [#allocation3], 4294966784 }
  0x1b   :  { %198 = dma.done.wait [#allocation6], 512  }
  0x1c   :  { %199 = vsyncadd [#allocation6], 4294966784  ;;  %v40_v0 = vld [vmem:[#allocation2] sm:$0xff]  ;;  %v41_v1 = vld [vmem:[#allocation2 + $0x8] sm:$0xff]  ;;  %s206_s0 = smov [#allocation7]  }
  0x1d   :  { %v42_v2 = vld [vmem:[#allocation2 + $0x10] sm:$0xff]  ;;  %v43_v3 = vld [vmem:[#allocation2 + $0x18] sm:$0xff]  ;;  %120 = vrcp.f32 %v40_v0  ;;  %v44_v4 = vld [vmem:[#allocation5] sm:$0xff]  ;;  %s105_s1 = sshll.u32 %s206_s0, 4  ;;  %s106_s1 = int_to_ptr.vmem [resolvable:$true] %s105_s1 }
  0x1e   :  { %122 = vrcp.f32 %v41_v1  ;;  %v45_v5 = vld [vmem:[#allocation5 + $0x8] sm:$0xff]  ;;  %v46_v7 = vld [vmem:[#allocation5 + $0x10] sm:$0xff]  ;;  %v47_v9 = vld [vmem:[#allocation5 + $0x18] sm:$0xff]  ;;  %vm63_vm0 = vcmp.gt.f32.partialorder %v44_v4, 0.0  ;;  %s176_s21 = scalar_lea.vmem %s106_s1, 128  ;;  %p181_p11 = scmp.lt.s32.totalorder %s106_s1, %s106_s1 }
  0x1f   :  { %124 = vrcp.f32 %v42_v2  ;;  %vm64_vm1 = vcmp.gt.f32.partialorder %v45_v5, 0.0  ;;  %vm65_vm2 = vcmp.gt.f32.partialorder %v46_v7, 0.0  ;;  %vm66_vm3 = vcmp.gt.f32.partialorder %v47_v9, 0.0  ;;  %p177_p10 = scmp.ne.s32.totalorder %s106_s1, %s176_s21  ;;  %p182_p12 = scmp.lt.s32.totalorder %s176_s21, %s176_s21 }
  0x20   :  { %126 = vrcp.f32 %v43_v3 }
  0x21   :  { %p183_p13 = por %p182_p12, %p181_p11 }
  0x23   :  { %p184_p0 = pnand %p183_p13, %p177_p10 }
  0x2a   :  { %v121_v6 = vpop.eup %120 }
  0x2b   :  { %v123_v8 = vpop.eup %122  ;;  %v72_v10 = vmul.f32 %v121_v6, %v44_v4 }
  0x2c   :  { %v125_v11 = vpop.eup %124  ;;  %v74_v12 = vmul.f32 %v123_v8, %v45_v5 }
  0x2d   :  { %v127_v13 = vpop.eup %126  ;;  %v76_v14 = vmul.f32 %v125_v11, %v46_v7  ;;  %128 = vlog2.f32 %v72_v10 }
  0x2e   :  { %v78_v15 = vmul.f32 %v127_v13, %v47_v9  ;;  %130 = vlog2.f32 %v74_v12 }
  0x2f   :  { %132 = vlog2.f32 %v76_v14 }
  0x30   :  { %134 = vlog2.f32 %v78_v15 }
  0x3a   :  { %v129_v16 = vpop.eup %128 }
  0x3b   :  { %v131_v17 = vpop.eup %130  ;;  %v80_v18 = vmul.f32 0.6931472, %v129_v16 }
  0x3c   :  { %v133_v19 = vpop.eup %132  ;;  %v82_v20 = vmul.f32 0.6931472, %v131_v17 }
  0x3d   :  { %v135_v21 = vpop.eup %134  ;;  %v84_v22 = vmul.f32 0.6931472, %v133_v19  ;;  %v87_v23 = vmul.f32 %v80_v18, %v44_v4 }
  0x3e   :  { %v86_v24 = vmul.f32 0.6931472, %v135_v21  ;;  %v88_v25 = vmul.f32 %v82_v20, %v45_v5 }
  0x3f   :  { %v89_v26 = vmul.f32 %v84_v22, %v46_v7  ;;  %v91_v27 = vsel %vm63_vm0, %v87_v23, 0.0 }
  0x40   :  { %v90_v28 = vmul.f32 %v86_v24, %v47_v9  ;;  %v92_v29 = vsel %vm64_vm1, %v88_v25, 0.0 }
  0x41   :  { %v93_v30 = vsel %vm65_vm2, %v89_v26, 0.0  ;;  %v95_v31 = vadd.f32 %v92_v29, %v91_v27 }
  0x42   :  { %v94_v32 = vsel %vm66_vm3, %v90_v28, 0.0 }
  0x43   :  { %v96_v33 = vadd.f32 %v95_v31, %v93_v30 }
  0x45   :  { %v97_v34 = vadd.f32 %v96_v33, %v94_v32 }
  0x47   :  { %98 = vst [vmem:[#allocation7] sm:$0xff] %v97_v34 }
  0x48   :  { %187 = shalt.err (!%p184_p0)
}
  0x49   :  { %108 = dma.vmem_to_hbm [thread:$0]  %s106_s1, 128, %s233_s2, [#allocation4]  }
  0x4a   :  { %200 = dma.done.wait [#allocation4], 128  }
  0x4b   :  { %201 = vsyncadd [#allocation4], 4294967168 }
  0x4c   :  { %112 = vsyncpa [#allocation3], 1 }
  0x4d   :  { %113 = vsyncpa [#allocation6], 1 }
  0x4e   :  { %114 = vsyncpa [#allocation4], 1 }

</bundles_post_ra>
